<compile_context>
chip_gen: v6e
topology: v6e:2x2x1
jax: 0.10.0
libtpu: 0.0.40
codegen_flags: <defaults>
</compile_context>

<pallas_src>
import jax
import jax.numpy as jnp
from jax.experimental import pallas as pl
from jax.experimental.pallas import tpu as pltpu


def _swish_kernel(x_ref, o_ref):
    x = x_ref[...]
    # Compute in f32.  exp lowers to the EUP (its own VLIW slot); the add /
    # divide / multiply land on the VALU, which has ample slack at the HBM
    # roofline for a 2-byte-or-4-byte-per-element streaming op.
    xf = x.astype(jnp.float32)
    sig = 1.0 / (1.0 + jnp.exp(-xf))
    o_ref[...] = (xf * sig).astype(o_ref.dtype)


def swish(x, *, tile_rows=2048, lanes=512):
    """Elementwise Swish on an arbitrarily-shaped array via a Pallas TPU kernel."""
    orig_shape = x.shape
    dtype = x.dtype
    n = x.size
    if n == 0:
        return x

    x_flat = x.reshape(-1)
    n_main = (n // lanes) * lanes  # bulk handled by the kernel, tail (<lanes) by JAX

    if n_main == 0:
        # Input smaller than one lane row: not worth a kernel launch.
        xf = x_flat.astype(jnp.float32)
        return (xf * jax.nn.sigmoid(xf)).astype(dtype).reshape(orig_shape)

    rows = n_main // lanes
    x2d = x_flat[:n_main].reshape(rows, lanes)

    if rows <= tile_rows:
        # Single block covering the full array (always a legal block shape,
        # even when rows is not a multiple of 8).
        tr = rows
        grid = (1,)
    else:
        # tile_rows is a multiple of 8 -> (8, 128)-legal block; cdiv grid lets
        # Pallas mask the partial boundary block instead of shrinking the tile.
        tr = tile_rows
        grid = (pl.cdiv(rows, tr),)

    out2d = pl.pallas_call(
        _swish_kernel,
        out_shape=jax.ShapeDtypeStruct((rows, lanes), dtype),
        grid_spec=pltpu.PrefetchScalarGridSpec(
            num_scalar_prefetch=0,
            grid=grid,
            in_specs=[pl.BlockSpec((tr, lanes), lambda i: (i, 0))],
            out_specs=pl.BlockSpec((tr, lanes), lambda i: (i, 0)),
        ),
        compiler_params=pltpu.CompilerParams(
            dimension_semantics=("parallel",),
            # 2x(in) + 2x(out) double-buffered 4 MiB blocks ~= 16 MiB; 32 MiB
            # leaves headroom and fits physical VMEM on v5e/v6e/v7x.
            vmem_limit_bytes=32 * 1024 * 1024,
        ),
    )(x2d)

    out_main = out2d.reshape(-1)
    if n_main == n:
        return out_main.reshape(orig_shape)

    # Ragged tail (< lanes elements): tiny plain-JAX epilogue, no padded copy.
    tail = x_flat[n_main:].astype(jnp.float32)
    tail_out = (tail * jax.nn.sigmoid(tail)).astype(dtype)
    return jnp.concatenate([out_main, tail_out]).reshape(orig_shape)


if __name__ == "__main__":
    key = jax.random.PRNGKey(0)
    # NCHW input, consistent with the EfficientNet adapter context.
    x = jax.random.normal(key, (2, 4, 16, 16), dtype=jnp.float32)

    y = swish(x)
    jax.block_until_ready(y)

    # Reference check against plain-JAX swish (exact sigmoid in the kernel,
    # so the tolerance can stay tight).
    y_ref = x * jax.nn.sigmoid(x)
    assert y.shape == x.shape and y.dtype == x.dtype
    max_err = float(jnp.max(jnp.abs(y - y_ref)))
    assert jnp.allclose(y, y_ref, atol=1e-5, rtol=1e-5), max_err

    print("KERNEL_OK")
</pallas_src>

<mosaic_0001>
module attributes {stable_mosaic.version = 11 : i64} {
  func.func @_swish_kernel(%arg0: i32, %arg1: memref<4x512xf32, #tpu.memory_space<vmem>>, %arg2: memref<4x512xf32, #tpu.memory_space<vmem>>) attributes {dimension_semantics = [#tpu.dimension_semantics<parallel>], iteration_bounds = array<i64: 1>, scalar_prefetch = 0 : i64, scratch_operands = 0 : i64, tpu.core_type = #tpu.core_type<tc>, window_params = [{transform_indices = @transform_0, window_bounds = array<i64: 4, 512>}, {transform_indices = @transform_1, window_bounds = array<i64: 4, 512>}]} {
    %c0 = arith.constant 0 : index
    %c0_0 = arith.constant 0 : index
    %0 = vector.load %arg1[%c0, %c0_0] : memref<4x512xf32, #tpu.memory_space<vmem>>, vector<4x512xf32>
    %cst = arith.constant 0.000000e+00 : f32
    %1 = vector.broadcast %cst : f32 to vector<4x512xf32>
    %2 = arith.subf %1, %0 : vector<4x512xf32>
    %3 = math.exp %2 : vector<4x512xf32>
    %cst_1 = arith.constant 1.000000e+00 : f32
    %4 = vector.broadcast %cst_1 : f32 to vector<4x512xf32>
    %5 = arith.addf %4, %3 : vector<4x512xf32>
    %cst_2 = arith.constant 1.000000e+00 : f32
    %6 = vector.broadcast %cst_2 : f32 to vector<4x512xf32>
    %7 = arith.divf %6, %5 : vector<4x512xf32>
    %8 = arith.mulf %0, %7 : vector<4x512xf32>
    %c0_3 = arith.constant 0 : index
    %c0_4 = arith.constant 0 : index
    %9 = vector.load %arg2[%c0_3, %c0_4] : memref<4x512xf32, #tpu.memory_space<vmem>>, vector<4x512xf32>
    tpu.vector_store %arg2[%c0_3, %c0_4], %8 {strides = array<i32>} : memref<4x512xf32, #tpu.memory_space<vmem>>, vector<4x512xf32>,
    return
  }
  func.func @transform_0(%arg0: i32) -> (i32, i32) {
    %c0_i32 = arith.constant 0 : i32
    %c0_i32_0 = arith.constant 0 : i32
    return %arg0, %c0_i32 : i32, i32
  }
  func.func @transform_1(%arg0: i32) -> (i32, i32) {
    %c0_i32 = arith.constant 0 : i32
    %c0_i32_0 = arith.constant 0 : i32
    return %arg0, %c0_i32 : i32, i32
  }
}

</mosaic_0001>

<bundles_post_ra>
// kernel: tpu_custom_call.1
= control target key start
LH: loop header
LB: loop body
LE: loop exit
PB: predicated region body
PF: predicated region fallthrough
CT: control target
= control target key end

     0   :  { %6 = vsyncpa [#allocation3], 0  ;;  %s126_s0 = inlined_call_operand.hbm [shape: f32[4,512], index: 0, kind: input, shape index: {}]   ;;  %s127_s1 = inlined_call_operand.hbm [shape: f32[4,512], index: 1, kind: output, shape index: {}]  }
   0x1   :  { %7 = vsyncpa [#allocation4], 0  ;;  %s108_s6 = smov [#allocation2]  }
   0x2   :  { %s14_s7 = sshll.u32 %s108_s6, 4  ;;  %s15_s7 = int_to_ptr.vmem [resolvable:$true] %s14_s7 }
   0x3   :  { %s72_s8 = scalar_lea.vmem %s15_s7, 256  ;;  %p77_p1 = scmp.lt.s32.totalorder %s15_s7, %s15_s7 }
   0x4   :  { %p73_p0 = scmp.ne.s32.totalorder %s15_s7, %s72_s8  ;;  %p78_p2 = scmp.lt.s32.totalorder %s72_s8, %s72_s8 }
   0x6   :  { %p79_p3 = por %p78_p2, %p77_p1 }
   0x8   :  { %p80_p4 = pnand %p79_p3, %p73_p0 }
   0xa   :  { %83 = shalt.err (!%p80_p4)
}
   0xb   :  { %17 = dma.hbm_to_vmem [thread:$0]  %s126_s0, 256, %s15_s7, [#allocation3]  }
   0xc   :  { %104 = dma.done.wait [#allocation3], 256  }
   0xd   :  { %105 = vsyncadd [#allocation3], 4294967040  ;;  %v21_v0 = vld [vmem:[#allocation2] sm:$0xff]  ;;  %v22_v1 = vld [vmem:[#allocation2 + $0x8] sm:$0xff]  ;;  %s109_s11 = smov [#allocation5]  }
   0xe   :  { %v23_v2 = vsub.f32 0.0, %v21_v0  ;;  %v24_v3 = vsub.f32 0.0, %v22_v1  ;;  %s45_s12 = sshll.u32 %s109_s11, 4  ;;  %s46_s12 = int_to_ptr.vmem [resolvable:$true] %s45_s12 }
   0xf   :  { %s84_s0 = scalar_lea.vmem %s46_s12, 256  ;;  %p89_p6 = scmp.lt.s32.totalorder %s46_s12, %s46_s12 }
  0x10   :  { %v25_v4 = vmul.f32 1.442695, %v23_v2  ;;  %v27_v5 = vmul.f32 1.442695, %v24_v3  ;;  %p85_p5 = scmp.ne.s32.totalorder %s46_s12, %s84_s0  ;;  %p90_p7 = scmp.lt.s32.totalorder %s84_s0, %s84_s0 }
  0x12   :  { %56 = vpow2.f32 %v25_v4  ;;  %p91_p8 = por %p90_p7, %p89_p6 }
  0x13   :  { %58 = vpow2.f32 %v27_v5 }
  0x14   :  { %p92_p9 = pnand %p91_p8, %p85_p5 }
  0x1f   :  { %v57_v6 = vpop.eup %56 }
  0x20   :  { %v59_v7 = vpop.eup %58  ;;  %v29_v8 = vadd.f32 1.0, %v57_v6 }
  0x21   :  { %v30_v9 = vadd.f32 1.0, %v59_v7 }
  0x22   :  { %60 = vrcp.f32 %v29_v8 }
  0x23   :  { %62 = vrcp.f32 %v30_v9 }
  0x2f   :  { %v61_v10 = vpop.eup %60 }
  0x30   :  { %v63_v11 = vpop.eup %62  ;;  %v35_v12 = vmul.f32 %v61_v10, %v21_v0 }
  0x31   :  { %v36_v13 = vmul.f32 %v63_v11, %v22_v1 }
  0x32   :  { %37 = vst [vmem:[#allocation5] sm:$0xff] %v35_v12 }
  0x33   :  { %38 = vst [vmem:[#allocation5 + $0x8] sm:$0xff] %v36_v13 }
  0x34   :  { %95 = shalt.err (!%p92_p9)
}
  0x35   :  { %48 = dma.vmem_to_hbm [thread:$0]  %s46_s12, 256, %s127_s1, [#allocation4]  }
  0x36   :  { %106 = dma.done.wait [#allocation4], 256  }
  0x37   :  { %107 = vsyncadd [#allocation4], 4294967040 }
  0x38   :  { %52 = vsyncpa [#allocation3], 1 }
  0x39   :  { %53 = vsyncpa [#allocation4], 1 }

</bundles_post_ra>
